<compile_context>
chip_gen: v6e
topology: v6e:2x2x1
jax: 0.10.0
libtpu: 0.0.40
codegen_flags: <defaults>
</compile_context>

<pallas_src>
import jax
import jax.numpy as jnp
from jax.experimental import pallas as pl
from jax.experimental.pallas import tpu as pltpu


def transition_kernel(x_ref, w_ref, o_ref):
    # x_ref: (1, 8, TP, Cin)   w_ref: (Cin, Cout_pad)   o_ref: (1, TP, Cout_pad)
    # AvgPool3d(2, 2): the 2x2x2 window is the major axis -> 7 lane-dense VPU adds,
    # accumulated in f32 on the pooled-size slab only.
    acc = x_ref[0, 0].astype(jnp.float32)
    for i in range(1, 8):
        acc = acc + x_ref[0, i].astype(jnp.float32)
    # 1x1x1 Conv3d (no bias) == per-voxel channel matmul on the MXU.  The 1/8 pool
    # factor is already folded into w.  Feed the MXU in the weight's dtype.
    y = jnp.dot(acc.astype(w_ref.dtype), w_ref[...],
                preferred_element_type=jnp.float32)      # (TP, Cout_pad)
    o_ref[0] = y.astype(o_ref.dtype)


def _choose_tp(P, Cin, Cout_pad, x_itemsize, out_itemsize,
               budget_bytes=32 * 1024 * 1024, cap=512):
    """Largest TP (multiple of 8, <= cap) whose double-buffered blocks fit the budget."""
    if P < 8:
        return P  # block dim == full array dim is always legal
    per_row = 2 * (8 * Cin * x_itemsize) + 2 * (Cout_pad * out_itemsize)
    tp = min(P, cap, max(8, budget_bytes // per_row))
    return max(8, (tp // 8) * 8)


def transition_layer(x_ncdhw, w_oc_ic):
    """x_ncdhw: (N, Cin, D, H, W), w_oc_ic: (Cout, Cin). Returns (N, Cout, D//2, H//2, W//2)."""
    N, Cin, D, H, W = x_ncdhw.shape
    Cout = w_oc_ic.shape[0]
    D2, H2, W2 = D // 2, H // 2, W // 2
    P = D2 * H2 * W2

    # Match PyTorch AvgPool3d(2, 2) flooring on odd spatial dims.
    x = x_ncdhw[:, :, : 2 * D2, : 2 * H2, : 2 * W2]

    # Single fused relayout: NCDHW -> (N, 8, P, Cin), window axis major, channels on lanes.
    x = x.reshape(N, Cin, D2, 2, H2, 2, W2, 2)
    x = jnp.transpose(x, (0, 3, 5, 7, 2, 4, 6, 1))        # (N, 2,2,2, D2,H2,W2, Cin)
    x = x.reshape(N, 8, P, Cin)

    # Weight: (Cout, Cin) -> (Cin, Cout_pad), with the AvgPool 1/8 folded in and the
    # output-channel dim padded to a multiple of 128 for lane-dense stores.
    Cout_pad = ((Cout + 127) // 128) * 128
    w = jnp.transpose(w_oc_ic, (1, 0)) * jnp.asarray(0.125, w_oc_ic.dtype)
    if Cout_pad != Cout:
        w = jnp.pad(w, ((0, 0), (0, Cout_pad - Cout)))

    out_dtype = x_ncdhw.dtype
    TP = _choose_tp(P, Cin, Cout_pad, x.dtype.itemsize,
                    jnp.dtype(out_dtype).itemsize)

    # VMEM: double-buffered in/out blocks + resident weight, plus headroom.
    in_block = 8 * TP * Cin * x.dtype.itemsize
    out_block = TP * Cout_pad * jnp.dtype(out_dtype).itemsize
    w_block = Cin * Cout_pad * w.dtype.itemsize
    vmem_limit = min(max(2 * in_block + 2 * out_block + w_block + (8 << 20),
                         24 << 20), 56 << 20)

    grid = (N, pl.cdiv(P, TP))
    out = pl.pallas_call(
        transition_kernel,
        out_shape=jax.ShapeDtypeStruct((N, P, Cout_pad), out_dtype),
        grid_spec=pltpu.PrefetchScalarGridSpec(
            num_scalar_prefetch=0,
            grid=grid,
            in_specs=[
                pl.BlockSpec((1, 8, TP, Cin), lambda n, p: (n, 0, p, 0)),
                pl.BlockSpec((Cin, Cout_pad), lambda n, p: (0, 0)),
            ],
            out_specs=pl.BlockSpec((1, TP, Cout_pad), lambda n, p: (n, p, 0)),
        ),
        compiler_params=pltpu.CompilerParams(
            dimension_semantics=("parallel", "parallel"),
            vmem_limit_bytes=int(vmem_limit),
        ),
    )(x, w)

    # Slice off lane padding and relayout back to NCDHW (fused into one output pass).
    out = out[:, :, :Cout].reshape(N, D2, H2, W2, Cout)
    return jnp.transpose(out, (0, 4, 1, 2, 3))


if __name__ == "__main__":
    key = jax.random.PRNGKey(0)
    kx, kw = jax.random.split(key)

    N, Cin, Cout = 2, 8, 4
    D = H = W = 8
    x = jax.random.normal(kx, (N, Cin, D, H, W), dtype=jnp.float32)
    # Conv3d(Cin, Cout, kernel_size=1, bias=False) weight: (Cout, Cin, 1, 1, 1) -> (Cout, Cin)
    w = jax.random.normal(kw, (Cout, Cin), dtype=jnp.float32) * 0.1

    out = jax.block_until_ready(transition_layer(x, w))

    # Pure-JAX reference (conv then pool, matching PyTorch op order).
    ref = jnp.einsum("oc,ncdhw->nodhw", w, x)
    ref = ref.reshape(N, Cout, D // 2, 2, H // 2, 2, W // 2, 2).mean(axis=(3, 5, 7))

    assert out.shape == (N, Cout, D // 2, H // 2, W // 2), out.shape
    assert jnp.allclose(out, ref, rtol=1e-4, atol=1e-5), float(jnp.max(jnp.abs(out - ref)))
    print("KERNEL_OK")
</pallas_src>

<mosaic_0001>
module attributes {stable_mosaic.version = 11 : i64} {
  func.func @transition_kernel(%arg0: i32, %arg1: i32, %arg2: memref<1x8x64x8xf32, #tpu.memory_space<vmem>>, %arg3: memref<8x128xf32, #tpu.memory_space<vmem>>, %arg4: memref<1x64x128xf32, #tpu.memory_space<vmem>>) attributes {dimension_semantics = [#tpu.dimension_semantics<parallel>, #tpu.dimension_semantics<parallel>], iteration_bounds = array<i64: 2, 1>, scalar_prefetch = 0 : i64, scratch_operands = 0 : i64, tpu.core_type = #tpu.core_type<tc>, window_params = [{transform_indices = @transform_0, window_bounds = array<i64: 1, 8, 64, 8>}, {pipeline_mode = #tpu.pipeline_mode<synchronous>, transform_indices = @transform_1, window_bounds = array<i64: 8, 128>}, {transform_indices = @transform_2, window_bounds = array<i64: 1, 64, 128>}]} {
    %c0 = arith.constant 0 : index
    %c0_0 = arith.constant 0 : index
    %c0_1 = arith.constant 0 : index
    %c0_2 = arith.constant 0 : index
    %0 = vector.load %arg2[%c0, %c0_0, %c0_1, %c0_2] : memref<1x8x64x8xf32, #tpu.memory_space<vmem>>, vector<1x1x64x8xf32>
    %1 = vector.shape_cast %0 : vector<1x1x64x8xf32> to vector<64x8xf32>
    %c0_3 = arith.constant 0 : index
    %c1 = arith.constant 1 : index
    %c0_4 = arith.constant 0 : index
    %c0_5 = arith.constant 0 : index
    %2 = vector.load %arg2[%c0_3, %c1, %c0_4, %c0_5] : memref<1x8x64x8xf32, #tpu.memory_space<vmem>>, vector<1x1x64x8xf32>
    %3 = vector.shape_cast %2 : vector<1x1x64x8xf32> to vector<64x8xf32>
    %4 = arith.addf %1, %3 : vector<64x8xf32>
    %c0_6 = arith.constant 0 : index
    %c2 = arith.constant 2 : index
    %c0_7 = arith.constant 0 : index
    %c0_8 = arith.constant 0 : index
    %5 = vector.load %arg2[%c0_6, %c2, %c0_7, %c0_8] : memref<1x8x64x8xf32, #tpu.memory_space<vmem>>, vector<1x1x64x8xf32>
    %6 = vector.shape_cast %5 : vector<1x1x64x8xf32> to vector<64x8xf32>
    %7 = arith.addf %4, %6 : vector<64x8xf32>
    %c0_9 = arith.constant 0 : index
    %c3 = arith.constant 3 : index
    %c0_10 = arith.constant 0 : index
    %c0_11 = arith.constant 0 : index
    %8 = vector.load %arg2[%c0_9, %c3, %c0_10, %c0_11] : memref<1x8x64x8xf32, #tpu.memory_space<vmem>>, vector<1x1x64x8xf32>
    %9 = vector.shape_cast %8 : vector<1x1x64x8xf32> to vector<64x8xf32>
    %10 = arith.addf %7, %9 : vector<64x8xf32>
    %c0_12 = arith.constant 0 : index
    %c4 = arith.constant 4 : index
    %c0_13 = arith.constant 0 : index
    %c0_14 = arith.constant 0 : index
    %11 = vector.load %arg2[%c0_12, %c4, %c0_13, %c0_14] : memref<1x8x64x8xf32, #tpu.memory_space<vmem>>, vector<1x1x64x8xf32>
    %12 = vector.shape_cast %11 : vector<1x1x64x8xf32> to vector<64x8xf32>
    %13 = arith.addf %10, %12 : vector<64x8xf32>
    %c0_15 = arith.constant 0 : index
    %c5 = arith.constant 5 : index
    %c0_16 = arith.constant 0 : index
    %c0_17 = arith.constant 0 : index
    %14 = vector.load %arg2[%c0_15, %c5, %c0_16, %c0_17] : memref<1x8x64x8xf32, #tpu.memory_space<vmem>>, vector<1x1x64x8xf32>
    %15 = vector.shape_cast %14 : vector<1x1x64x8xf32> to vector<64x8xf32>
    %16 = arith.addf %13, %15 : vector<64x8xf32>
    %c0_18 = arith.constant 0 : index
    %c6 = arith.constant 6 : index
    %c0_19 = arith.constant 0 : index
    %c0_20 = arith.constant 0 : index
    %17 = vector.load %arg2[%c0_18, %c6, %c0_19, %c0_20] : memref<1x8x64x8xf32, #tpu.memory_space<vmem>>, vector<1x1x64x8xf32>
    %18 = vector.shape_cast %17 : vector<1x1x64x8xf32> to vector<64x8xf32>
    %19 = arith.addf %16, %18 : vector<64x8xf32>
    %c0_21 = arith.constant 0 : index
    %c7 = arith.constant 7 : index
    %c0_22 = arith.constant 0 : index
    %c0_23 = arith.constant 0 : index
    %20 = vector.load %arg2[%c0_21, %c7, %c0_22, %c0_23] : memref<1x8x64x8xf32, #tpu.memory_space<vmem>>, vector<1x1x64x8xf32>
    %21 = vector.shape_cast %20 : vector<1x1x64x8xf32> to vector<64x8xf32>
    %22 = arith.addf %19, %21 : vector<64x8xf32>
    %c0_24 = arith.constant 0 : index
    %c0_25 = arith.constant 0 : index
    %23 = vector.load %arg3[%c0_24, %c0_25] : memref<8x128xf32, #tpu.memory_space<vmem>>, vector<8x128xf32>
    %cst = arith.constant dense<0.000000e+00> : vector<64x128xf32>
    %24 = tpu.matmul %22, %23, %cst {dimension_numbers = #tpu.dot_dimension_numbers<[1], [0], [0], [1], [0, 0, 1, 1], [], []>} : vector<64x8xf32>, vector<8x128xf32>, vector<64x128xf32> -> vector<64x128xf32>
    %c0_26 = arith.constant 0 : index
    %c0_27 = arith.constant 0 : index
    %c0_28 = arith.constant 0 : index
    %25 = vector.load %arg4[%c0_26, %c0_27, %c0_28] : memref<1x64x128xf32, #tpu.memory_space<vmem>>, vector<1x64x128xf32>
    %26 = vector.shape_cast %25 : vector<1x64x128xf32> to vector<64x128xf32>
    %27 = vector.shape_cast %24 : vector<64x128xf32> to vector<1x64x128xf32>
    tpu.vector_store %arg4[%c0_26, %c0_27, %c0_28], %27 {strides = array<i32>} : memref<1x64x128xf32, #tpu.memory_space<vmem>>, vector<1x64x128xf32>,
    return
  }
  func.func @transform_0(%arg0: i32, %arg1: i32) -> (i32, i32, i32, i32) {
    %c0_i32 = arith.constant 0 : i32
    %c0_i32_0 = arith.constant 0 : i32
    %c0_i32_1 = arith.constant 0 : i32
    return %arg0, %c0_i32, %arg1, %c0_i32_0 : i32, i32, i32, i32
  }
  func.func @transform_1(%arg0: i32, %arg1: i32) -> (i32, i32) {
    %c0_i32 = arith.constant 0 : i32
    %c0_i32_0 = arith.constant 0 : i32
    %c0_i32_1 = arith.constant 0 : i32
    return %c0_i32, %c0_i32_0 : i32, i32
  }
  func.func @transform_2(%arg0: i32, %arg1: i32) -> (i32, i32, i32) {
    %c0_i32 = arith.constant 0 : i32
    %c0_i32_0 = arith.constant 0 : i32
    return %arg0, %arg1, %c0_i32 : i32, i32, i32
  }
}

</mosaic_0001>

<bundles_post_ra>
// kernel: tpu_custom_call.1
= control target key start
LH: loop header
LB: loop body
LE: loop exit
PB: predicated region body
PF: predicated region fallthrough
CT: control target
= control target key end

     0   :  { %7 = vsyncpa [#allocation3], 0  ;;  %s982_s0 = inlined_call_operand.vmem [shape: f32[2,8,64,8], index: 0, kind: input, shape index: {}]   ;;  %s983_s1 = inlined_call_operand.vmem [shape: f32[8,128], index: 1, kind: input, shape index: {}]   ;;  %s984_s2 = inlined_call_operand.hbm [shape: f32[2,64,128], index: 2, kind: output, shape index: {}]  }
   0x1   :  { %9 = vsyncpa [#allocation3 + $0x1], 0  ;;  %s791_s9 = smov 0   ;;  %s793_s10 = smov 0  }
   0x2   :  { %s795_s11 = smov 0   ;;  %s797_s12 = smov 0  }
   0x3   :  { %s799_s13 = smov 0   ;;  %s801_s14 = smov 0  }
   0x4 LB: > { %s534_s15 = sadd.s32 4294967295, %s771_s14   ;;  %s535_s16 = sadd.s32 4294967294, %s771_s14   ;;  %s771_s14 = sphi %s801_s14, %s15_s14   ;;  %s767_s13 = sphi %s799_s13, %s991_s13   ;;  %s763_s12 = sphi %s797_s12, %s990_s12   ;;  %s759_s11 = sphi %s795_s11, %s989_s11   ;;  %s755_s10 = sphi %s793_s10, %s988_s10   ;;  %s751_s9 = sphi %s791_s9, %s987_s9  }
   0x5   : > { %s27_s17 = sadd.s32 1, %s767_s13  ;;  %s85_s18 = sadd.s32 1, %s759_s11 }
   0x6   : > { %p29_p0 = scmp.ge.s32.totalorder %s27_s17, 2  ;;  %p95_p1 = scmp.ne.s32.totalorder %s759_s11, %s755_s10 }
   0x7   : > { %p96_p2 = scmp.eq.s32.totalorder %s534_s15, 1  ;;  %p101_p3 = scmp.ne.s32.totalorder %s755_s10, %s751_s9 }
   0x8   : > { %s993_s17 = smov (%p29_p0, %s27_s17), 0  ;;  %p102_p5 = scmp.eq.s32.totalorder %s535_s16, 1 }
   0x9   : > { %p831_p4 = por %p96_p2, %p95_p1  ;;  %s80_s20 = ssub.s32 %s767_s13, %s993_s17 }
   0xa   : > { %p538_p6 = scmp.ge.s32.totalorder %s771_s14, 1  ;;  %p83_p7 = scmp.eq.s32.totalorder %s80_s20, 0 }
   0xb   : > { %p838_p8 = por %p102_p5, %p101_p3  ;;  %p136_p9 = scmp.lt.s32.totalorder %s771_s14, 3 }
   0xc   : > { %s844_s22 = scalar_select %p83_p7, %s759_s11, %s85_s18  }
   0xd   : > { %p137_p10 = pnand %p538_p6, %p136_p9 }
   0xe   : > { %p163_p11 = scmp.lt.s32.totalorder (!%p137_p10), %s763_s12, 1  ;;  %s159_s30 = sand.u32 (!%p137_p10), 1, %s755_s10  }
   0xf   : > { %140 = sbr.rel (%p137_p10) target bundleno = 265 (0x109), region = 28  ;;  %s539_s3 = sshll.u32 (!%p137_p10), %s159_s30, 6 }
  0x10   : > { %s161_s4 = scalar_lea.vmem (!%p137_p10), [#allocation2], %s539_s3  ;;  %s612_s6 = sshll.u32 (!%p137_p10), %s763_s12, 10 }
  0x11   : > { %s455_s5 = sshll.u32 (!%p137_p10), %s161_s4, 4  ;;  %s935_s15 = scalar_lea.hbm (!%p137_p10), %s984_s2, %s612_s6  ;;  %s930_s5 = int_to_ptr.vmem [resolvable:$true] %s455_s5 }
  0x12   : > { %s937_s16 = scalar_lea.sflag (!%p137_p10), [#allocation3], %s159_s30  ;;  %s773_s18 = smov (!%p137_p10), [#allocation2]  }
  0x13   : > { %s699_s20 = sshll.u32 (!%p137_p10), %s773_s18, 4  ;;  %s700_s20 = int_to_ptr.vmem [resolvable:$false] %s699_s20 }
  0x14   : > { %v300_v0 = vld [vmem:[%s983_s1] sm:$0xff]  ;;  %s164_s25 = scalar_select %p163_p11, %s763_s12, 1  ;;  %vm301_vm0 = vcmask 64512  }
  0x15   : > { %622 = vmatprep.subr.mxu0 %v300_v0  ;;  %636 = vmatprep.subr.mxu1 %v300_v0  ;;  %s695_s12 = scalar_lea.vmem %s930_s5, 1024  ;;  %s701_s23 = scalar_lea.vmem %s700_s20, 2048 }
  0x16   : > { %623 = vmatpush3.msra.mxu0 %v300_v0  ;;  %637 = vmatpush3.msra.mxu1 %v300_v0  ;;  %s611_s26 = sshll.u32 %s164_s25, 9  ;;  %p696_p12 = scmp.ne.s32.totalorder %s930_s5, %s695_s12 }
  0x17   : > { %s854_s29 = scalar_lea.vmem %s982_s0, %s611_s26  ;;  %p702_p1 = scmp.lt.s32.totalorder %s930_s5, %s700_s20 }
  0x18   : > { %v173_v1 = vld [vmem:[%s854_s29] sm:$0xff]  ;;  %v174_v14 = vld [vmem:[%s854_s29 + $0x8] sm:$0xff]  ;;  %v175_v38 = vld [vmem:[%s854_s29 + $0x10] sm:$0xff]  ;;  %p697_p13 = pnand %p696_p12, %p831_p4  ;;  %p703_p2 = scmp.lt.s32.totalorder %s701_s23, %s695_s12 }
  0x19   : > { %v542_v2 = vld [vmem:[%s854_s29 + $0x40] sm:$0xff]  ;;  %v543_v15 = vld [vmem:[%s854_s29 + $0x48] sm:$0xff]  ;;  %v544_v42 = vld [vmem:[%s854_s29 + $0x50] sm:$0xff] }
  0x1a   : > { %v550_v3 = vld [vmem:[%s854_s29 + $0x80] sm:$0xff]  ;;  %v190_v4 = vadd.f32 %v542_v2, %v173_v1  ;;  %v191_v18 = vadd.f32 %v543_v15, %v174_v14  ;;  %v551_v19 = vld [vmem:[%s854_s29 + $0x88] sm:$0xff]  ;;  %v552_v43 = vld [vmem:[%s854_s29 + $0x90] sm:$0xff]  ;;  %v192_v49 = vadd.f32 %v544_v42, %v175_v38  ;;  %p698_p0 = pneg %p697_p13  ;;  %p704_p3 = por %p703_p2, %p702_p1 }
  0x1b   : > { %v558_v5 = vld [vmem:[%s854_s29 + $0xc0] sm:$0xff]  ;;  %v559_v23 = vld [vmem:[%s854_s29 + $0xc8] sm:$0xff]  ;;  %v560_v52 = vld [vmem:[%s854_s29 + $0xd0] sm:$0xff] }
  0x1c   : > { %v177_v6 = vld [vmem:[%s854_s29 + $0x20] sm:$0xff]  ;;  %v207_v7 = vadd.f32 %v550_v3, %v190_v4  ;;  %v208_v25 = vadd.f32 %v551_v19, %v191_v18  ;;  %v178_v26 = vld [vmem:[%s854_s29 + $0x28] sm:$0xff]  ;;  %v179_v53 = vld [vmem:[%s854_s29 + $0x30] sm:$0xff]  ;;  %v209_v59 = vadd.f32 %v552_v43, %v192_v49  ;;  %p705_p5 = pnand %p704_p3, %p698_p0 }
  0x1d   : > { %v546_v8 = vld [vmem:[%s854_s29 + $0x60] sm:$0xff]  ;;  %v547_v27 = vld [vmem:[%s854_s29 + $0x68] sm:$0xff]  ;;  %v548_v54 = vld [vmem:[%s854_s29 + $0x70] sm:$0xff] }
  0x1e   : > { %v554_v9 = vld [vmem:[%s854_s29 + $0xa0] sm:$0xff]  ;;  %v194_v11 = vadd.f32 %v546_v8, %v177_v6  ;;  %v224_v12 = vadd.f32 %v558_v5, %v207_v7  ;;  %v555_v28 = vld [vmem:[%s854_s29 + $0xa8] sm:$0xff]  ;;  %v195_v33 = vadd.f32 %v547_v27, %v178_v26  ;;  %v225_v36 = vadd.f32 %v559_v23, %v208_v25  ;;  %v556_v61 = vld [vmem:[%s854_s29 + $0xb0] sm:$0xff] }
  0x1f   : > { %v566_v10 = vld [vmem:[%s854_s29 + $0x100] sm:$0xff]  ;;  %v567_v32 = vld [vmem:[%s854_s29 + $0x108] sm:$0xff]  ;;  %v196_v60 = vadd.f32 %v548_v54, %v179_v53  ;;  %v568_v0 = vld [vmem:[%s854_s29 + $0x110] sm:$0xff]  ;;  %v226_v4 = vadd.f32 %v560_v52, %v209_v59 }
  0x20   : > { %v562_v13 = vld [vmem:[%s854_s29 + $0xe0] sm:$0xff]  ;;  %v211_v17 = vadd.f32 %v554_v9, %v194_v11  ;;  %v241_v20 = vadd.f32 %v566_v10, %v224_v12  ;;  %v563_v37 = vld [vmem:[%s854_s29 + $0xe8] sm:$0xff]  ;;  %v212_v41 = vadd.f32 %v555_v28, %v195_v33  ;;  %v242_v46 = vadd.f32 %v567_v32, %v225_v36  ;;  %v564_v1 = vld [vmem:[%s854_s29 + $0xf0] sm:$0xff] }
  0x21   : > { %v574_v16 = vld [vmem:[%s854_s29 + $0x140] sm:$0xff]  ;;  %v575_v40 = vld [vmem:[%s854_s29 + $0x148] sm:$0xff]  ;;  %v213_v5 = vadd.f32 %v556_v61, %v196_v60  ;;  %v176_v6 = vld [vmem:[%s854_s29 + $0x18] sm:$0xff]  ;;  %v243_v15 = vadd.f32 %v568_v0, %v226_v4 }
  0x22   : > { %v582_v21 = vld [vmem:[%s854_s29 + $0x180] sm:$0xff]  ;;  %v228_v24 = vadd.f32 %v562_v13, %v211_v17  ;;  %v258_v29 = vadd.f32 %v574_v16, %v241_v20  ;;  %v583_v47 = vld [vmem:[%s854_s29 + $0x188] sm:$0xff]  ;;  %v229_v51 = vadd.f32 %v563_v37, %v212_v41  ;;  %v259_v56 = vadd.f32 %v575_v40, %v242_v46  ;;  %v545_v7 = vld [vmem:[%s854_s29 + $0x58] sm:$0xff] }
  0x23   : > { %v570_v22 = vld [vmem:[%s854_s29 + $0x120] sm:$0xff]  ;;  %v571_v48 = vld [vmem:[%s854_s29 + $0x128] sm:$0xff]  ;;  %v553_v8 = vld [vmem:[%s854_s29 + $0x98] sm:$0xff]  ;;  %v193_v13 = vadd.f32 %v545_v7, %v176_v6  ;;  %v230_v17 = vadd.f32 %v564_v1, %v213_v5 }
  0x24   : > { %v590_v30 = vld [vmem:[%s854_s29 + $0x1c0] sm:$0xff]  ;;  %v245_v34 = vadd.f32 %v570_v22, %v228_v24  ;;  %v275_v39 = vadd.f32 %v582_v21, %v258_v29  ;;  %v591_v57 = vld [vmem:[%s854_s29 + $0x1c8] sm:$0xff]  ;;  %v246_v62 = vadd.f32 %v571_v48, %v229_v51  ;;  %v276_v3 = vadd.f32 %v583_v47, %v259_v56  ;;  %v576_v11 = vld [vmem:[%s854_s29 + $0x150] sm:$0xff] }
  0x25   : > { %v578_v31 = vld [vmem:[%s854_s29 + $0x160] sm:$0xff]  ;;  %v579_v58 = vld [vmem:[%s854_s29 + $0x168] sm:$0xff]  ;;  %v572_v12 = vld [vmem:[%s854_s29 + $0x130] sm:$0xff]  ;;  %v210_v22 = vadd.f32 %v553_v8, %v193_v13  ;;  %v260_v25 = vadd.f32 %v576_v11, %v243_v15 }
  0x26   : > { %v586_v35 = vld [vmem:[%s854_s29 + $0x1a0] sm:$0xff]  ;;  %v262_v44 = vadd.f32 %v578_v31, %v245_v34  ;;  %v292_v50 = vadd.f32 %v590_v30, %v275_v39  ;;  %v587_v63 = vld [vmem:[%s854_s29 + $0x1a8] sm:$0xff]  ;;  %v263_v9 = vadd.f32 %v579_v58, %v246_v62  ;;  %v293_v14 = vadd.f32 %v591_v57, %v276_v3  ;;  %v584_v16 = vld [vmem:[%s854_s29 + $0x190] sm:$0xff] }
  0x27   : > { %v594_v45 = vld [vmem:[%s854_s29 + $0x1e0] sm:$0xff]  ;;  %v595_v10 = vld [vmem:[%s854_s29 + $0x1e8] sm:$0xff]  ;;  %v561_v18 = vld [vmem:[%s854_s29 + $0xd8] sm:$0xff]  ;;  %v247_v26 = vadd.f32 %v572_v12, %v230_v17  ;;  %v277_v34 = vadd.f32 %v584_v16, %v260_v25 }
  0x28   : > { %v279_v55 = vadd.f32 %v586_v35, %v262_v44  ;;  %624 = vmatprep.mubr.msk.f32.mxu0 %vm301_vm0, %v292_v50  ;;  %v180_v19 = vld [vmem:[%s854_s29 + $0x38] sm:$0xff]  ;;  %v280_v20 = vadd.f32 %v587_v63, %v263_v9  ;;  %v580_v21 = vld [vmem:[%s854_s29 + $0x170] sm:$0xff]  ;;  %v227_v32 = vadd.f32 %v561_v18, %v210_v22 }
  0x29   : > { %v549_v23 = vld [vmem:[%s854_s29 + $0x78] sm:$0xff]  ;;  %625 = vmatmul.mubr.msk.f32.vlgmr.msra.gmra.mxu0 %vm301_vm0, %v293_v14  ;;  %v592_v30 = vld [vmem:[%s854_s29 + $0x1d0] sm:$0xff]  ;;  %v264_v35 = vadd.f32 %v580_v21, %v247_v26 }
  0x2a   : > { %v296_v2 = vadd.f32 %v594_v45, %v279_v55  ;;  %v557_v24 = vld [vmem:[%s854_s29 + $0xb8] sm:$0xff]  ;;  %v197_v28 = vadd.f32 %v549_v23, %v180_v19  ;;  %v297_v29 = vadd.f32 %v595_v10, %v280_v20  ;;  %v588_v31 = vld [vmem:[%s854_s29 + $0x1b0] sm:$0xff]  ;;  %v294_v41 = vadd.f32 %v592_v30, %v277_v34 }
  0x2b   : > { %v569_v27 = vld [vmem:[%s854_s29 + $0x118] sm:$0xff]  ;;  %v596_v38 = vld [vmem:[%s854_s29 + $0x1f0] sm:$0xff]  ;;  %v281_v42 = vadd.f32 %v588_v31, %v264_v35 }
  0x2c   : > { %630 = vmatprep.mubr.msk.f32.mxu1 %vm301_vm0, %v296_v2  ;;  %v565_v33 = vld [vmem:[%s854_s29 + $0xf8] sm:$0xff]  ;;  %v214_v37 = vadd.f32 %v557_v24, %v197_v28  ;;  %v244_v39 = vadd.f32 %v569_v27, %v227_v32  ;;  %627 = vmatprep.mubr.msk.f32.mxu0 %vm301_vm0, %v294_v41 }
  0x2d   : > { %v577_v36 = vld [vmem:[%s854_s29 + $0x158] sm:$0xff]  ;;  %631 = vmatmul.mubr.msk.f32.vlgmr.msra.gmra.mxu1 %vm301_vm0, %v297_v29  ;;  %v298_v47 = vadd.f32 %v596_v38, %v281_v42 }
  0x2e   : > { %v573_v40 = vld [vmem:[%s854_s29 + $0x138] sm:$0xff]  ;;  %v231_v44 = vadd.f32 %v565_v33, %v214_v37  ;;  %v261_v45 = vadd.f32 %v577_v36, %v244_v39 }
  0x2f   : > { %v585_v43 = vld [vmem:[%s854_s29 + $0x198] sm:$0xff]  ;;  %633 = vmatprep.mubr.msk.f32.mxu1 %vm301_vm0, %v298_v47 }
  0x30   : > { %v581_v46 = vld [vmem:[%s854_s29 + $0x178] sm:$0xff]  ;;  %v248_v49 = vadd.f32 %v573_v40, %v231_v44  ;;  %v278_v50 = vadd.f32 %v585_v43, %v261_v45 }
  0x31   : > { %v593_v48 = vld [vmem:[%s854_s29 + $0x1d8] sm:$0xff] }
  0x32   : > { %v589_v51 = vld [vmem:[%s854_s29 + $0x1b8] sm:$0xff]  ;;  %v265_v52 = vadd.f32 %v581_v46, %v248_v49  ;;  %v295_v53 = vadd.f32 %v593_v48, %v278_v50 }
  0x33   : > { %v597_v54 = vld [vmem:[%s854_s29 + $0x1f8] sm:$0xff] }
  0x34   : > { %v282_v55 = vadd.f32 %v589_v51, %v265_v52  ;;  %628 = vmatmul.mubr.msk.f32.gmra.mxu0 %vm301_vm0, %v295_v53 }
  0x36   : > { %v299_v56 = vadd.f32 %v597_v54, %v282_v55 }
  0x38   : > { %634 = vmatmul.mubr.msk.f32.gmra.mxu1 %vm301_vm0, %v299_v56 }
  0xe9   : > { %v626_v57 = vpop.f32.mrf.mxu0 }
  0xea   : > { %432 = vst [vmem:[%s161_s4 + $0x8] sm:$0xff] %v626_v57 }
  0xeb   : > { %v392_v58 = vpop.f32.mrf.mxu0 }
  0xec   : > { %431 = vst [vmem:[%s161_s4] sm:$0xff] %v392_v58 }
  0xed   : > { %v632_v59 = vpop.f32.mrf.mxu1 }
  0xee   : > { %436 = vst [vmem:[%s161_s4 + $0x28] sm:$0xff] %v632_v59 }
  0xef   : > { %v412_v60 = vpop.f32.mrf.mxu1 }
  0xf0   : > { %435 = vst [vmem:[%s161_s4 + $0x20] sm:$0xff] %v412_v60 }
  0xf4   : > { %v629_v61 = vpop.f32.mrf.mxu0 }
  0xf5   : > { %434 = vst [vmem:[%s161_s4 + $0x18] sm:$0xff] %v629_v61 }
  0xf6   : > { %v402_v62 = vpop.f32.mrf.mxu0 }
  0xf7   : > { %433 = vst [vmem:[%s161_s4 + $0x10] sm:$0xff] %v402_v62 }
  0xf8   : > { %v635_v63 = vpop.f32.mrf.mxu1 }
  0xf9   : > { %438 = vst [vmem:[%s161_s4 + $0x38] sm:$0xff] %v635_v63 }
  0xfa   : > { %v422_v0 = vpop.f32.mrf.mxu1 }
  0xfb   : > { %437 = vst [vmem:[%s161_s4 + $0x30] sm:$0xff] %v422_v0 }
  0xfc   : > { %708 = shalt.err (!%p705_p5)
}
  0xfd   : > { %s709_s24 = scalar_lea.hbm %s935_s15, 1024  ;;  %s713_s27 = scalar_lea.hbm %s984_s2, 2048 }
  0xfe   : > { %p710_p6 = scmp.ne.s32.totalorder %s935_s15, %s709_s24  ;;  %p714_p10 = scmp.lt.s32.totalorder %s935_s15, %s984_s2 }
  0xff   : > { %p715_p11 = scmp.lt.s32.totalorder %s713_s27, %s709_s24 }
 0x100   : > { %p711_p7 = pnand %p710_p6, %p831_p4 }
 0x101   : > { %p716_p12 = por %p715_p11, %p714_p10 }
 0x102   : > { %p712_p9 = pneg %p711_p7 }
 0x104   : > { %p717_p13 = pnand %p716_p12, %p712_p9 }
 0x106   : > { %720 = shalt.err (!%p717_p13)
}
 0x107   : > { %s774_s30 = smov 128   ;;  %s775_s3 = smov 8  }
 0x108   : > { %638 = dma.vmem_to_hbm [thread:$0]  (%p831_p4), %s930_s5, 1024, %s935_s15, %s937_s16, %s774_s30, %s774_s30, %s775_s3  }
 0x109 PF: > { %p644_p0 = scmp.ge.s32.totalorder %s771_s14, 2  ;;  %s470_s4 = sand.u32 1, %s751_s9  }
 0x10a   : > { %s471_s6 = scalar_lea.sflag [#allocation3], %s470_s4 }
 0x10b   : > { %p641_p1 = pnand %p644_p0, %p838_p8 }
 0x10d   : > { %p642_p2 = pneg %p641_p1 }
 0x10f   : > { %746 = dma.done.wait (%p642_p2), %s471_s6, 1024  }
 0x110   : > { %748 = vsyncadd (%p642_p2), %s471_s6, 4294966272  ;;  %s15_s14 = sadd.s32 1, %s771_s14   ;;  %s987_s9 = smov %s755_s10 }
 0x111   : > { %p12_p3 = scmp.ge.s32.totalorder %s15_s14, 4   ;;  %s988_s10 = smov %s759_s11 }
 0x112   : > { %s989_s11 = smov %s844_s22  ;;  %s990_s12 = smov %s767_s13 }
 0x113   : > { %s991_s13 = smov %s993_s17  ;;  %14 = sbr.rel (!%p12_p3) target bundleno = 4 (0x4), region = 70 }
 0x118   :  { %476 = vsyncpa [#allocation3], 1 }
 0x119   :  { %478 = vsyncpa [#allocation3 + $0x1], 1 }

</bundles_post_ra>
